<compile_context>
chip_gen: v7x
topology: tpu7x:2x2x1
jax: 0.10.0
libtpu: 0.0.40
codegen_flags: <defaults>
</compile_context>

<pallas_src>
import math
import functools

import numpy as np
import jax
import jax.numpy as jnp
from jax import lax
from jax.experimental import pallas as pl
from jax.experimental.pallas import tpu as pltpu


# ----------------------------------------------------------------------------
# Pallas kernel: fused (num_param,1)-strided conv (single K=inc*num_param
# matmul) + folded BatchNorm + SiLU on a lane-dense spatial tile.
# ----------------------------------------------------------------------------
def _conv_bn_silu_kernel(xo_ref, w_ref, shift_ref, o_ref):
    # xo_ref:    (1, K, TILE_S)    bf16, K = inc*num_param (channel-major, tap-minor)
    # w_ref:     (OUTC, K)         bf16, BN scale already folded in
    # shift_ref: (OUTC, 1)         f32,  folded BN shift
    # o_ref:     (1, OUTC, TILE_S) f32
    y = jnp.dot(w_ref[...], xo_ref[0],
                preferred_element_type=jnp.float32)          # MXU, f32 accumulate
    y = y + shift_ref[...]                                   # BN shift
    o_ref[0] = (y * jax.nn.sigmoid(y)).astype(o_ref.dtype)   # SiLU


# ----------------------------------------------------------------------------
# Plain-JAX glue: offset branch + sampling locations / bilinear gather.
# ----------------------------------------------------------------------------
def _p_conv(x, params, stride):
    # 3x3, padding=1, stride=stride; weight is zero-initialized per the module.
    out = lax.conv_general_dilated(
        x, params["w_p"], (stride, stride), ((1, 1), (1, 1)),
        dimension_numbers=("NCHW", "OIHW", "NCHW"))
    return out + params["b_p"][None, :, None, None]


def _sampling_locations(offset, x_hw, num_param, stride):
    """Returns (idxs, gs): (B, 4, N, hw) int32 indices into H*W and f32 weights."""
    B = offset.shape[0]
    N = num_param
    H, W = x_hw
    h, wd = offset.shape[2], offset.shape[3]

    # _get_p_n (tap pattern, not centered — matches the reference module).
    base_int = round(math.sqrt(num_param))
    row_number = num_param // base_int
    mod_number = num_param % base_int
    p_n_x = np.repeat(np.arange(row_number), base_int)
    p_n_y = np.tile(np.arange(base_int), row_number)
    if mod_number > 0:
        p_n_x = np.concatenate([p_n_x, np.full((mod_number,), row_number)])
        p_n_y = np.concatenate([p_n_y, np.arange(mod_number)])
    p_n = np.concatenate([p_n_x, p_n_y]).astype(np.float32)            # (2N,)

    # _get_p_0 (output-grid base coordinates).
    ii = np.arange(0, h * stride, stride, dtype=np.float32)
    jj = np.arange(0, wd * stride, stride, dtype=np.float32)
    p0x = np.broadcast_to(ii[:, None], (h, wd))
    p0y = np.broadcast_to(jj[None, :], (h, wd))
    p_0 = np.concatenate([np.broadcast_to(p0x, (N, h, wd)),
                          np.broadcast_to(p0y, (N, h, wd))], axis=0)    # (2N, h, wd)

    p = offset + jnp.asarray(p_0)[None] + jnp.asarray(p_n)[None, :, None, None]
    p = jnp.transpose(p, (0, 2, 3, 1))                                   # (B, h, wd, 2N)

    def clamp_xy(q):
        return jnp.concatenate([jnp.clip(q[..., :N], 0, H - 1),
                                jnp.clip(q[..., N:], 0, W - 1)], axis=-1)

    q_floor = jnp.floor(p)
    q_lt = clamp_xy(q_floor).astype(jnp.int32)
    q_rb = clamp_xy(q_floor + 1.0).astype(jnp.int32)
    q_lb = jnp.concatenate([q_lt[..., :N], q_rb[..., N:]], axis=-1)
    q_rt = jnp.concatenate([q_rb[..., :N], q_lt[..., N:]], axis=-1)

    pc = clamp_xy(p)
    px, py = pc[..., :N], pc[..., N:]

    def g_fn(q, sx, sy):
        qx = q[..., :N].astype(p.dtype)
        qy = q[..., N:].astype(p.dtype)
        return (1.0 + sx * (qx - px)) * (1.0 + sy * (qy - py))

    gs = jnp.stack([g_fn(q_lt, 1.0, 1.0), g_fn(q_rb, -1.0, -1.0),
                    g_fn(q_lb, 1.0, -1.0), g_fn(q_rt, -1.0, 1.0)], axis=1)   # (B,4,h,wd,N)
    idxs = jnp.stack([q[..., :N] * W + q[..., N:]
                      for q in (q_lt, q_rb, q_lb, q_rt)], axis=1)            # (B,4,h,wd,N)

    hw = h * wd
    # Taps on the slow axis, spatial fastest (lane-dense downstream layout).
    idxs = jnp.transpose(idxs, (0, 1, 4, 2, 3)).reshape(B, 4, N, hw).astype(jnp.int32)
    gs = jnp.transpose(gs, (0, 1, 4, 2, 3)).reshape(B, 4, N, hw).astype(jnp.float32)
    return idxs, gs


def _bilinear_sample(x_flat, idxs, gs):
    """4-corner gather + bilinear combine.  O(4*C*M) work, done by XLA's gather."""
    # x_flat: (B, C, HW) f32; idxs/gs: (B, 4, N, hw)
    def one(xb, ib):                       # xb: (C, HW), ib: (4, N, hw)
        return xb[:, ib]                   # (C, 4, N, hw)
    xg = jax.vmap(one)(x_flat, idxs)       # (B, C, 4, N, hw)
    return jnp.sum(gs[:, None] * xg, axis=2)   # (B, C, N, hw)


# ----------------------------------------------------------------------------
# Forward wrapper (NCHW in / NCHW out)
# ----------------------------------------------------------------------------
def ldconv2d_forward(x, params, num_param, stride=1):
    B, C, H, W = x.shape
    N = num_param

    offset = _p_conv(x, params, stride)                     # (B, 2N, h, w)
    h, wd = offset.shape[2], offset.shape[3]
    hw = h * wd

    idxs, gs = _sampling_locations(offset, (H, W), N, stride)
    x_flat = jnp.reshape(x, (B, C, H * W)).astype(jnp.float32)
    xo = _bilinear_sample(x_flat, idxs, gs)                 # (B, C, N, hw)

    K = C * N
    xo = xo.reshape(B, K, hw)

    # Lane-dense spatial tiling: pad hw up to a multiple of TILE_S (>=128 lanes).
    TILE_S = 512 if hw >= 512 else 128 * pl.cdiv(hw, 128)
    hw_pad = TILE_S * pl.cdiv(hw, TILE_S)
    if hw_pad != hw:
        xo = jnp.pad(xo, ((0, 0), (0, 0), (0, hw_pad - hw)))
    xo = xo.astype(jnp.bfloat16)

    # Fold eval-mode BatchNorm scale into the conv weight; keep shift for the epilogue.
    outc = params["w_conv"].shape[0]
    scale = params["gamma"] / jnp.sqrt(params["rv"] + 1e-5)
    shift = (params["beta"] - params["rm"] * scale).reshape(outc, 1).astype(jnp.float32)
    w = params["w_conv"][:, :, :, 0]                                    # (outc, C, N)
    w = (w * scale[:, None, None]).reshape(outc, K).astype(jnp.bfloat16)

    grid = (B, hw_pad // TILE_S)
    out = pl.pallas_call(
        _conv_bn_silu_kernel,
        out_shape=jax.ShapeDtypeStruct((B, outc, hw_pad), jnp.float32),
        grid=grid,
        in_specs=[
            pl.BlockSpec((1, K, TILE_S), lambda b, s: (b, 0, s)),
            pl.BlockSpec((outc, K), lambda b, s: (0, 0)),
            pl.BlockSpec((outc, 1), lambda b, s: (0, 0)),
        ],
        out_specs=pl.BlockSpec((1, outc, TILE_S), lambda b, s: (b, 0, s)),
        compiler_params=pltpu.CompilerParams(
            dimension_semantics=("parallel", "parallel")),
    )(xo, w, shift)

    return out[:, :, :hw].reshape(B, outc, h, wd)


# ----------------------------------------------------------------------------
# Pure-JAX f32 reference (no weight fold, HIGHEST precision) for validation.
# ----------------------------------------------------------------------------
def _reference_forward(x, params, num_param, stride=1):
    B, C, H, W = x.shape
    offset = _p_conv(x, params, stride)
    h, wd = offset.shape[2], offset.shape[3]
    idxs, gs = _sampling_locations(offset, (H, W), num_param, stride)
    x_flat = x.reshape(B, C, H * W).astype(jnp.float32)
    xo = _bilinear_sample(x_flat, idxs, gs)                              # (B,C,N,hw)
    w = params["w_conv"][:, :, :, 0]                                     # (outc, C, N)
    out = jnp.einsum("ocn,bcnm->bom", w, xo,
                     precision=jax.lax.Precision.HIGHEST)                # (B, outc, hw)
    scale = params["gamma"] / jnp.sqrt(params["rv"] + 1e-5)
    shift = params["beta"] - params["rm"] * scale
    y = out * scale[None, :, None] + shift[None, :, None]
    y = y * jax.nn.sigmoid(y)
    return y.reshape(B, -1, h, wd)


# ----------------------------------------------------------------------------
# Deterministic parameter init (mirrors LDConv_2D.__init__ shapes)
# ----------------------------------------------------------------------------
def init_params(key, inc, outc, num_param):
    k1, k2 = jax.random.split(key)
    return dict(
        # p_conv: Conv2d(inc, 2*num_param, 3, padding=1); weight zero-init per module.
        w_p=jnp.zeros((2 * num_param, inc, 3, 3), jnp.float32),
        b_p=jax.random.uniform(k1, (2 * num_param,), jnp.float32, -0.5, 0.5),
        # main conv: Conv2d(inc, outc, kernel=(num_param,1), stride=(num_param,1), bias=None)
        w_conv=0.1 * jax.random.normal(k2, (outc, inc, num_param, 1), jnp.float32),
        # BatchNorm2d(outc) parameters / running stats (inference mode).
        gamma=jnp.ones((outc,), jnp.float32),
        beta=jnp.zeros((outc,), jnp.float32),
        rm=jnp.zeros((outc,), jnp.float32),
        rv=jnp.ones((outc,), jnp.float32),
    )
    # TODO(synk): BatchNorm is applied in inference mode (running stats); the
    # PyTorch module in train() mode would use batch statistics instead.


if __name__ == "__main__":
    B, inc, outc, H, W = 2, 4, 8, 16, 16
    num_param, stride = 5, 1

    key = jax.random.PRNGKey(0)
    kx, kp = jax.random.split(key)
    x = jax.random.normal(kx, (B, inc, H, W), jnp.float32)
    params = init_params(kp, inc, outc, num_param)

    fwd = jax.jit(functools.partial(ldconv2d_forward, num_param=num_param, stride=stride))
    out = jax.block_until_ready(fwd(x, params))

    ref = _reference_forward(x, params, num_param, stride)
    assert out.shape == (B, outc, H, W), out.shape
    np.testing.assert_allclose(np.asarray(out), np.asarray(ref), rtol=2e-2, atol=2e-2)
    print("KERNEL_OK")
</pallas_src>

<mosaic_0001>
module attributes {stable_mosaic.version = 11 : i64} {
  func.func @_conv_bn_silu_kernel(%arg0: i32, %arg1: i32, %arg2: memref<1x20x256xbf16, #tpu.memory_space<vmem>>, %arg3: memref<8x20xbf16, #tpu.memory_space<vmem>>, %arg4: memref<8x1xf32, #tpu.memory_space<vmem>>, %arg5: memref<1x8x256xf32, #tpu.memory_space<vmem>>) attributes {dimension_semantics = [#tpu.dimension_semantics<parallel>, #tpu.dimension_semantics<parallel>], iteration_bounds = array<i64: 2, 1>, scalar_prefetch = 0 : i64, scratch_operands = 0 : i64, tpu.core_type = #tpu.core_type<tc>, window_params = [{transform_indices = @transform_0, window_bounds = array<i64: 1, 20, 256>}, {pipeline_mode = #tpu.pipeline_mode<synchronous>, transform_indices = @transform_1, window_bounds = array<i64: 8, 20>}, {pipeline_mode = #tpu.pipeline_mode<synchronous>, transform_indices = @transform_2, window_bounds = array<i64: 8, 1>}, {transform_indices = @transform_3, window_bounds = array<i64: 1, 8, 256>}]} {
    %c0 = arith.constant 0 : index
    %c0_0 = arith.constant 0 : index
    %0 = vector.load %arg3[%c0, %c0_0] : memref<8x20xbf16, #tpu.memory_space<vmem>>, vector<8x20xbf16>
    %c0_1 = arith.constant 0 : index
    %c0_2 = arith.constant 0 : index
    %c0_3 = arith.constant 0 : index
    %1 = vector.load %arg2[%c0_1, %c0_2, %c0_3] : memref<1x20x256xbf16, #tpu.memory_space<vmem>>, vector<1x20x256xbf16>
    %2 = vector.shape_cast %1 : vector<1x20x256xbf16> to vector<20x256xbf16>
    %cst = arith.constant dense<0.000000e+00> : vector<8x256xf32>
    %3 = tpu.matmul %0, %2, %cst {dimension_numbers = #tpu.dot_dimension_numbers<[1], [0], [0], [1], [0, 0, 1, 1], [], []>} : vector<8x20xbf16>, vector<20x256xbf16>, vector<8x256xf32> -> vector<8x256xf32>
    %c0_4 = arith.constant 0 : index
    %c0_5 = arith.constant 0 : index
    %4 = vector.load %arg4[%c0_4, %c0_5] : memref<8x1xf32, #tpu.memory_space<vmem>>, vector<8x1xf32>
    %5 = vector.broadcast %4 : vector<8x1xf32> to vector<8x256xf32>
    %6 = arith.addf %3, %5 : vector<8x256xf32>
    %7 = arith.negf %6 : vector<8x256xf32>
    %8 = math.exp %7 : vector<8x256xf32>
    %cst_6 = arith.constant 1.000000e+00 : f32
    %9 = vector.broadcast %cst_6 : f32 to vector<8x256xf32>
    %10 = arith.addf %9, %8 : vector<8x256xf32>
    %11 = arith.divf %9, %10 : vector<8x256xf32>
    %12 = arith.mulf %6, %11 : vector<8x256xf32>
    %c0_7 = arith.constant 0 : index
    %c0_8 = arith.constant 0 : index
    %c0_9 = arith.constant 0 : index
    %13 = vector.load %arg5[%c0_7, %c0_8, %c0_9] : memref<1x8x256xf32, #tpu.memory_space<vmem>>, vector<1x8x256xf32>
    %14 = vector.shape_cast %13 : vector<1x8x256xf32> to vector<8x256xf32>
    %15 = vector.shape_cast %12 : vector<8x256xf32> to vector<1x8x256xf32>
    tpu.vector_store %arg5[%c0_7, %c0_8, %c0_9], %15 {strides = array<i32>} : memref<1x8x256xf32, #tpu.memory_space<vmem>>, vector<1x8x256xf32>,
    return
  }
  func.func @transform_0(%arg0: i32, %arg1: i32) -> (i32, i32, i32) {
    %c0_i32 = arith.constant 0 : i32
    %c0_i32_0 = arith.constant 0 : i32
    return %arg0, %c0_i32, %arg1 : i32, i32, i32
  }
  func.func @transform_1(%arg0: i32, %arg1: i32) -> (i32, i32) {
    %c0_i32 = arith.constant 0 : i32
    %c0_i32_0 = arith.constant 0 : i32
    %c0_i32_1 = arith.constant 0 : i32
    return %c0_i32, %c0_i32_0 : i32, i32
  }
  func.func @transform_2(%arg0: i32, %arg1: i32) -> (i32, i32) {
    %c0_i32 = arith.constant 0 : i32
    %c0_i32_0 = arith.constant 0 : i32
    %c0_i32_1 = arith.constant 0 : i32
    return %c0_i32, %c0_i32_0 : i32, i32
  }
  func.func @transform_3(%arg0: i32, %arg1: i32) -> (i32, i32, i32) {
    %c0_i32 = arith.constant 0 : i32
    %c0_i32_0 = arith.constant 0 : i32
    return %arg0, %c0_i32, %arg1 : i32, i32, i32
  }
}

</mosaic_0001>

<bundles_post_ra>
// kernel: ldconv2d_forward.1
= control target key start
LH: loop header
LB: loop body
LE: loop exit
PB: predicated region body
PF: predicated region fallthrough
CT: control target
= control target key end

     0   :  { %s495_s12 = smov 0   ;;  %s497_s13 = smov 0   ;;  %s538_s0 = inlined_call_operand.vmem [shape: bf16[2,20,256], index: 0, kind: input, shape index: {}]   ;;  %s539_s1 = inlined_call_operand.vmem [shape: bf16[8,20], index: 1, kind: input, shape index: {}]   ;;  %s540_s2 = inlined_call_operand.vmem [shape: f32[8,1], index: 2, kind: input, shape index: {}]   ;;  %s541_s3 = inlined_call_operand.vmem [shape: f32[2,8,256], index: 3, kind: output, shape index: {}]  }
   0x1   :  { %s499_s14 = smov 0  }
   0x2 LB: > { %s25_s15 = sadd.s32 1, %s468_s13  ;;  %p395_p0 = scmp.ge.s32.totalorder %s472_s14, 1  ;;  %s472_s14 = sphi %s499_s14, %s13_s14   ;;  %s468_s13 = sphi %s497_s13, %s543_s13   ;;  %s464_s12 = sphi %s495_s12, %s542_s12  }
   0x3   : > { %p27_p1 = scmp.ge.s32.totalorder %s25_s15, 2  ;;  %p158_p2 = scmp.lt.s32.totalorder %s472_s14, 3 }
   0x5   : > { %s545_s15 = smov (%p27_p1, %s25_s15), 0  ;;  %p159_p3 = pnand %p395_p0, %p158_p2 }
   0x6   : > { %p191_p4 = scmp.lt.s32.totalorder (!%p159_p3), %s464_s12, 1  ;;  %v474_v0 = vmov (!%p159_p3), 0   ;;  %v215_v1 = vld [vmem:[%s540_s2] sm:$0xff] (!%p159_p3)  ;;  %vm240_vm0 = vcmask (!%p159_p3), 1041408   ;;  %vm236_vm1 = vcmask (!%p159_p3), 162816  }
   0x7   : > { %162 = sbr.rel (%p159_p3) target bundleno = 271 (0x10f), region = 32  ;;  %279 = vmatprep.mubr.bf16.mxu0 (!%p159_p3), %v474_v0  ;;  %436 = vset.pattern.permute.xlu0 (!%p159_p3), %v474_v0  ;;  %v211_v8 = vld [vmem:[%s539_s1] sm:$0xf] (!%p159_p3) }
   0x8   : > { %218 = vperm.xlu0 (!%p159_p3), %436, %v215_v1  }
   0xe   : > { %s547_s12 = smov (!%p191_p4, %s464_s12), 1 }
   0xf   : > { %s410_s18 = smul.u32 24, %s547_s12  ;;  %s409_s24 = sshll.u32 %s547_s12, 4 }
  0x10   : > { %s208_s27 = scalar_lea.vmem %s541_s3, %s409_s24 }
  0x11   : > { %s198_s21 = scalar_lea.vmem %s538_s0, %s410_s18 }
  0x12   : > { %v214_v2 = vld [vmem:[%s198_s21 + $0x10] sm:$0x33]  ;;  %v437_v3 = vld [vmem:[%s198_s21 + $0x4] ss:$8 sps:$4 sm:$0xff]   ;;  %v440_v5 = vld [vmem:[%s198_s21] ss:$8 sps:$4 sm:$0xff]  }
  0x13   : > { %v402_v4 = vcombine.high %v214_v2, %v214_v2  ;;  %v401_v6 = vcombine.low %v214_v2, %v214_v2  ;;  %247 = vmatprep.subr.bf16.mxu0 %v437_v3 }
  0x14   : > { %248 = vmatpush1.bf16.msra.mxu0 %v440_v5 }
  0x15   : > { %403 = vmatprep.subr.msk.bf16.mxu0 %vm240_vm0, %v402_v4  ;;  %v242_v7 = vsel %vm240_vm0, %v401_v6, 0 }
  0x18   : > { %250 = vmatpush1.bf16.msra.mxu0 %v242_v7 }
  0x1b   : > { %404 = vmatmul.mubr.msk.bf16.vlgmr.msra.gmra.mrb[0].mxu0 %vm236_vm1, %v211_v8 }
  0x87   : > { %v219_v9 = vpop.permute.xlu0 %218 }
  0xee   : > { %v281_v10 = vpop.f32.mrb[0].mxu0 }
  0xef   : > { %v282_v11 = vadd.f32 %v281_v10, %v219_v9  ;;  %v283_v12 = vpop.f32.mrb[1].mxu0 }
  0xf0   : > { %v284_v13 = vadd.f32 %v283_v12, %v219_v9  ;;  %v285_v14 = vpop.f32.mrb[2].mxu0 }
  0xf1   : > { %v405_v15 = vmul.f32 -1.442695, %v282_v11  ;;  %v286_v16 = vpop.f32.mrb[3].mxu0 }
  0xf2   : > { %v406_v17 = vmul.f32 -1.442695, %v284_v13 }
  0xf3   : > { %442 = vpow2.f32 %v405_v15 }
  0xf4   : > { %444 = vpow2.f32 %v406_v17 }
  0xfd   : > { %v443_v18 = vpop.eup %442 }
  0xfe   : > { %v445_v19 = vpop.eup %444  ;;  %v294_v20 = vadd.f32 1.0, %v443_v18 }
  0xff   : > { %v295_v21 = vadd.f32 1.0, %v445_v19 }
 0x100   : > { %446 = vrcp.f32 %v294_v20 }
 0x101   : > { %448 = vrcp.f32 %v295_v21 }
 0x10a   : > { %v447_v22 = vpop.eup %446 }
 0x10b   : > { %v449_v23 = vpop.eup %448  ;;  %v300_v24 = vmul.f32 %v447_v22, %v282_v11 }
 0x10c   : > { %v301_v25 = vmul.f32 %v449_v23, %v284_v13 }
 0x10d   : > { %302 = vst [vmem:[%s208_s27] sm:$0xff] %v300_v24 }
 0x10e   : > { %303 = vst [vmem:[%s208_s27 + $0x8] sm:$0xff] %v301_v25 }
 0x10f PF: > { %s13_s14 = sadd.s32 1, %s472_s14   ;;  %s542_s12 = smov %s468_s13 }
 0x110   : > { %p10_p5 = scmp.ge.s32.totalorder %s13_s14, 4   ;;  %s543_s13 = smov %s545_s15 }
 0x112   :  { %12 = sbr.rel (!%p10_p5) target bundleno = 2 (0x2), region = 62 }

</bundles_post_ra>
